<compile_context>
chip_gen: v7x
topology: tpu7x:2x2x1
jax: 0.10.0
libtpu: 0.0.40
codegen_flags: <defaults>
</compile_context>

<pallas_src>
import math

import jax
import jax.numpy as jnp
from jax.experimental import pallas as pl
from jax.experimental.pallas import tpu as pltpu

# Hyperparameters (HyperLinear defaults + small test sizes)
NOISE_DIM = 8      # noise_dim
HID = 32           # out_features == hidden_dim (== feature dim of x)
ACT = 2            # action_dim
PRIOR_SCALE = 1.0
POSTERIOR_SCALE = 1.0

B = 2              # batch
N = 4              # number of noise vectors per batch element (z second dim)
S = 8              # sequence length of x

DP1 = NOISE_DIM + 1          # augmented noise dim (bias folded into the matmul)
KCAT = 2 * ACT * HID         # 128 = [a0:(hyper|prior) | a1:(hyper|prior)] columns


def hyperlinear_kernel(zaug_ref, wcat_ref, xbd_ref, o_ref):
    # Stage 1: all hypernetwork linears (hyper + prior, both actions, whole
    # batch, biases, scales) as one lane-dense MXU matmul: (B*N, 9) @ (9, 128).
    theta = jnp.dot(zaug_ref[...], wcat_ref[...],
                    preferred_element_type=jnp.float32)            # (B*N, 128)

    # Stage 2: one batched block-diagonal contraction fuses both actions and
    # the (posterior + prior) mix: (B, N, 128) @ (B, 128, ACT*S) -> (B, N, ACT*S).
    theta_b = theta.reshape(B, N, KCAT)                            # sublane split only
    o_ref[...] = jnp.einsum('bnk,bks->bns', theta_b, xbd_ref[...],
                            preferred_element_type=jnp.float32)    # (B, N, ACT*S)


def hyperlinear_forward(z, x, prior_x, w_hyper, b_hyper, w_prior, b_prior):
    f32 = jnp.float32

    # ---- wrapper-side layout fusions (pure parameter / data plumbing) ------
    # z augmented with a ones column so the bias becomes one extra weight row.
    z_flat = z.reshape(B * N, NOISE_DIM).astype(f32)
    z_aug = jnp.concatenate([z_flat, jnp.ones((B * N, 1), f32)], axis=1)  # (B*N, 9)

    def per_action(w, bias, scale):
        # (ACT*HID, NOISE_DIM) -> (ACT, NOISE_DIM+1, HID); scale folded in.
        w_t = jnp.transpose(w.reshape(ACT, HID, NOISE_DIM), (0, 2, 1))
        b_t = bias.reshape(ACT, 1, HID)
        return (scale * jnp.concatenate([w_t, b_t], axis=1)).astype(f32)

    wh = per_action(w_hyper, b_hyper, POSTERIOR_SCALE)    # (ACT, 9, HID)
    wp = per_action(w_prior, b_prior, PRIOR_SCALE)        # (ACT, 9, HID)
    w_pa = jnp.concatenate([wh, wp], axis=2)               # (ACT, 9, 2*HID)
    w_cat = jnp.concatenate([w_pa[a] for a in range(ACT)], axis=1)  # (9, 128)

    # Block-diagonal RHS per batch element; contraction layout matches the
    # w_cat column order, output columns are (action, seq).
    xcat = jnp.concatenate([jnp.swapaxes(x, 1, 2),
                            jnp.swapaxes(prior_x, 1, 2)],
                           axis=1).astype(f32)              # (B, 2*HID, S)
    zeros = jnp.zeros_like(xcat)
    blocks = []
    for a in range(ACT):
        row = [xcat if j == a else zeros for j in range(ACT)]
        blocks.append(jnp.concatenate(row, axis=2))         # (B, 2*HID, ACT*S)
    x_bd = jnp.concatenate(blocks, axis=1)                  # (B, 128, ACT*S)

    out_slab = pl.pallas_call(
        hyperlinear_kernel,
        out_shape=jax.ShapeDtypeStruct((B, N, ACT * S), f32),
        grid=(1,),
        in_specs=[
            pl.BlockSpec((B * N, DP1), lambda i: (0, 0)),
            pl.BlockSpec((DP1, KCAT), lambda i: (0, 0)),
            pl.BlockSpec((B, KCAT, ACT * S), lambda i: (0, 0, 0)),
        ],
        out_specs=pl.BlockSpec((B, N, ACT * S), lambda i: (0, 0, 0)),
        compiler_params=pltpu.CompilerParams(dimension_semantics=("arbitrary",)),
    )(z_aug, w_cat, x_bd)

    # (B, N, ACT*S) -> (B, N, ACT, S) -> PyTorch layout (B, N, S, ACT) ('bnsa')
    return jnp.transpose(out_slab.reshape(B, N, ACT, S), (0, 1, 3, 2))


if __name__ == "__main__":
    key = jax.random.PRNGKey(0)
    kz, kx, kpx, kw1, kw2 = jax.random.split(key, 5)

    z = jax.random.normal(kz, (B, N, NOISE_DIM), jnp.float32)
    x = jax.random.normal(kx, (B, S, HID), jnp.float32)
    prior_x = jax.random.normal(kpx, (B, S, HID), jnp.float32)

    # Deterministic parameter init: xavier_normal weights, zero biases
    # (weight_init='xavier_normal', bias_init='zeros-zeros')
    xav_std = math.sqrt(2.0 / (NOISE_DIM + ACT * HID))
    w_hyper = xav_std * jax.random.normal(kw1, (ACT * HID, NOISE_DIM), jnp.float32)
    w_prior = xav_std * jax.random.normal(kw2, (ACT * HID, NOISE_DIM), jnp.float32)
    b_hyper = jnp.zeros((ACT * HID,), jnp.float32)
    b_prior = jnp.zeros((ACT * HID,), jnp.float32)

    out = jax.block_until_ready(
        hyperlinear_forward(z, x, prior_x, w_hyper, b_hyper, w_prior, b_prior)
    )

    # Pure-JAX reference of the PyTorch forward for a correctness sanity check
    theta = jnp.einsum('bnd,od->bno', z, w_hyper) + b_hyper
    theta = theta.reshape(B, N, ACT, HID)
    ref = jnp.einsum('bsd,bnad->bnsa', x, theta)
    ptheta = jnp.einsum('bnd,od->bno', z, w_prior) + b_prior
    ptheta = ptheta.reshape(B, N, ACT, HID)
    pref = jnp.einsum('bsd,bnad->bnsa', prior_x, ptheta)
    ref = POSTERIOR_SCALE * ref + PRIOR_SCALE * pref

    assert out.shape == (B, N, S, ACT), out.shape
    assert jnp.allclose(out, ref, atol=1e-4, rtol=1e-4), "mismatch vs reference"
    print("KERNEL_OK")
</pallas_src>

<mosaic_0001>
module attributes {stable_mosaic.version = 11 : i64} {
  func.func @hyperlinear_kernel(%arg0: i32, %arg1: memref<8x9xf32, #tpu.memory_space<vmem>>, %arg2: memref<9x128xf32, #tpu.memory_space<vmem>>, %arg3: memref<2x128x16xf32, #tpu.memory_space<vmem>>, %arg4: memref<2x4x16xf32, #tpu.memory_space<vmem>>) attributes {dimension_semantics = [#tpu.dimension_semantics<arbitrary>], iteration_bounds = array<i64: 1>, scalar_prefetch = 0 : i64, scratch_operands = 0 : i64, tpu.core_type = #tpu.core_type<tc>, window_params = [{pipeline_mode = #tpu.pipeline_mode<synchronous>, transform_indices = @transform_0, window_bounds = array<i64: 8, 9>}, {pipeline_mode = #tpu.pipeline_mode<synchronous>, transform_indices = @transform_1, window_bounds = array<i64: 9, 128>}, {pipeline_mode = #tpu.pipeline_mode<synchronous>, transform_indices = @transform_2, window_bounds = array<i64: 2, 128, 16>}, {pipeline_mode = #tpu.pipeline_mode<synchronous>, transform_indices = @transform_3, window_bounds = array<i64: 2, 4, 16>}]} {
    %c0 = arith.constant 0 : index
    %c0_0 = arith.constant 0 : index
    %0 = vector.load %arg1[%c0, %c0_0] : memref<8x9xf32, #tpu.memory_space<vmem>>, vector<8x9xf32>
    %c0_1 = arith.constant 0 : index
    %c0_2 = arith.constant 0 : index
    %1 = vector.load %arg2[%c0_1, %c0_2] : memref<9x128xf32, #tpu.memory_space<vmem>>, vector<9x128xf32>
    %cst = arith.constant dense<0.000000e+00> : vector<8x128xf32>
    %2 = tpu.matmul %0, %1, %cst {dimension_numbers = #tpu.dot_dimension_numbers<[1], [0], [0], [1], [0, 0, 1, 1], [], []>} : vector<8x9xf32>, vector<9x128xf32>, vector<8x128xf32> -> vector<8x128xf32>
    %3 = vector.shape_cast %2 : vector<8x128xf32> to vector<2x4x128xf32>
    %c0_3 = arith.constant 0 : index
    %c0_4 = arith.constant 0 : index
    %c0_5 = arith.constant 0 : index
    %4 = vector.load %arg3[%c0_3, %c0_4, %c0_5] : memref<2x128x16xf32, #tpu.memory_space<vmem>>, vector<2x128x16xf32>
    "tpu.trace_start"() <{level = 10 : i32, message = "bnk,bks->bns"}> : () -> ()
    %cst_6 = arith.constant dense<0.000000e+00> : vector<2x4x16xf32>
    %5 = tpu.matmul %3, %4, %cst_6 {dimension_numbers = #tpu.dot_dimension_numbers<[2], [1], [1], [2], [0, 0, 0, 1, 1, 2], [0], [0]>} : vector<2x4x128xf32>, vector<2x128x16xf32>, vector<2x4x16xf32> -> vector<2x4x16xf32>
    "tpu.trace_stop"() : () -> ()
    %c0_7 = arith.constant 0 : index
    %c0_8 = arith.constant 0 : index
    %c0_9 = arith.constant 0 : index
    %6 = vector.load %arg4[%c0_7, %c0_8, %c0_9] : memref<2x4x16xf32, #tpu.memory_space<vmem>>, vector<2x4x16xf32>
    tpu.vector_store %arg4[%c0_7, %c0_8, %c0_9], %5 {strides = array<i32>} : memref<2x4x16xf32, #tpu.memory_space<vmem>>, vector<2x4x16xf32>,
    return
  }
  func.func @transform_0(%arg0: i32) -> (i32, i32) {
    %c0_i32 = arith.constant 0 : i32
    %c0_i32_0 = arith.constant 0 : i32
    %c0_i32_1 = arith.constant 0 : i32
    return %c0_i32, %c0_i32_0 : i32, i32
  }
  func.func @transform_1(%arg0: i32) -> (i32, i32) {
    %c0_i32 = arith.constant 0 : i32
    %c0_i32_0 = arith.constant 0 : i32
    %c0_i32_1 = arith.constant 0 : i32
    return %c0_i32, %c0_i32_0 : i32, i32
  }
  func.func @transform_2(%arg0: i32) -> (i32, i32, i32) {
    %c0_i32 = arith.constant 0 : i32
    %c0_i32_0 = arith.constant 0 : i32
    %c0_i32_1 = arith.constant 0 : i32
    %c0_i32_2 = arith.constant 0 : i32
    return %c0_i32, %c0_i32_0, %c0_i32_1 : i32, i32, i32
  }
  func.func @transform_3(%arg0: i32) -> (i32, i32, i32) {
    %c0_i32 = arith.constant 0 : i32
    %c0_i32_0 = arith.constant 0 : i32
    %c0_i32_1 = arith.constant 0 : i32
    %c0_i32_2 = arith.constant 0 : i32
    return %c0_i32, %c0_i32_0, %c0_i32_1 : i32, i32, i32
  }
}

</mosaic_0001>

<bundles_post_ra>
// kernel: tpu_custom_call.1
= control target key start
LH: loop header
LB: loop body
LE: loop exit
PB: predicated region body
PF: predicated region fallthrough
CT: control target
= control target key end

     0   :  { %vm22_vm0 = vcmask 1040384   ;;  %v489_v2 = vmov 0.0|0.0   ;;  %vm490_vm1 = vmmov 1   ;;  %vm491_vm3 = vmmov 0   ;;  %s653_s0 = inlined_call_operand.vmem [shape: f32[8,9], index: 0, kind: input, shape index: {}]   ;;  %s654_s1 = inlined_call_operand.vmem [shape: f32[9,128], index: 1, kind: input, shape index: {}]   ;;  %s655_s2 = inlined_call_operand.vmem [shape: f32[2,128,16], index: 2, kind: input, shape index: {}]   ;;  %s656_s3 = inlined_call_operand.hbm [shape: f32[2,4,16], index: 3, kind: output, shape index: {}]  }
   0x1   :  { %v16_v0 = vld [vmem:[%s654_s1] sm:$0xff]  ;;  %v17_v1 = vld [vmem:[%s654_s1 + $0x8] sm:$0x1]  ;;  %406 = vmatprep.subr.bf16.mxu0 %v489_v2  ;;  %vm408_vm2 = vmpackc.low %vm22_vm0, %vm490_vm1  ;;  %410 = vmatprep.subr.bf16.mxu1 %v489_v2  ;;  %v492_v5 = vmov 0.0   ;;  %vm18_vm4 = vcmask 72704  }
   0x2   :  { %v407_v3 = vpack.c.bf16 %v17_v1, %v16_v0  ;;  %v99_v4 = vld [vmem:[%s655_s2] sm:$0xff]  ;;  %333 = vmatprep.mubr.msk.f32.mxu0 %vm491_vm3, %v492_v5  ;;  %v100_v6 = vld [vmem:[%s655_s2 + $0x8] sm:$0xff]  ;;  %368 = vmatprep.mubr.msk.f32.mxu1 %vm491_vm3, %v492_v5  ;;  %v101_v12 = vld [vmem:[%s655_s2 + $0x10] sm:$0xff] }
   0x3   :  { %v115_v7 = vld [vmem:[%s655_s2 + $0x80] sm:$0xff]  ;;  %v116_v8 = vld [vmem:[%s655_s2 + $0x88] sm:$0xff]  ;;  %v411_v10 = vpack.c.bf16 %v100_v6, %v99_v4  ;;  %v102_v13 = vld [vmem:[%s655_s2 + $0x18] sm:$0xff] }
   0x4   :  { %409 = vmatpush3.bf16.msk.msra.mxu0 %vm408_vm2, %v407_v3  ;;  %v15_v9 = vld [vmem:[%s653_s0] sm:$0xff]  ;;  %v435_v11 = vpack.c.bf16 %v116_v8, %v115_v7  ;;  %v117_v14 = vld [vmem:[%s655_s2 + $0x90] sm:$0xff]  ;;  %v118_v15 = vld [vmem:[%s655_s2 + $0x98] sm:$0xff]  ;;  %v414_v16 = vpack.c.bf16 %v102_v13, %v101_v12 }
   0x5   :  { %434 = vmatprep.subr.bf16.mxu0 %v489_v2  ;;  %412 = vmatpush3.bf16.msra.mxu1 %v411_v10  ;;  %v103_v17 = vld [vmem:[%s655_s2 + $0x20] sm:$0xff]  ;;  %v104_v18 = vld [vmem:[%s655_s2 + $0x28] sm:$0xff]  ;;  %v438_v19 = vpack.c.bf16 %v118_v15, %v117_v14  ;;  %v105_v23 = vld [vmem:[%s655_s2 + $0x30] sm:$0xff] }
   0x6   :  { %413 = vmatprep.subr.bf16.mxu1 %v489_v2  ;;  %v119_v20 = vld [vmem:[%s655_s2 + $0xa0] sm:$0xff]  ;;  %v120_v21 = vld [vmem:[%s655_s2 + $0xa8] sm:$0xff]  ;;  %v417_v22 = vpack.c.bf16 %v104_v18, %v103_v17  ;;  %v106_v24 = vld [vmem:[%s655_s2 + $0x38] sm:$0xff] }
   0x7   :  { %334 = vmatmul.mubr.msk.f32.vlgmr.msra.gmra.mrb[0].mxu0 %vm18_vm4, %v15_v9  ;;  %v441_v25 = vpack.c.bf16 %v120_v21, %v119_v20 }
   0x8   :  { %436 = vmatpush3.bf16.msra.mxu0 %v435_v11  ;;  %403 = vmatprep.mubr.msk.f32.mxu0 %vm491_vm3, %v492_v5 }
   0x9   :  { %437 = vmatprep.subr.bf16.mxu0 %v489_v2  ;;  %415 = vmatpush3.bf16.msra.mxu1 %v414_v16 }
   0xa   :  { %416 = vmatprep.subr.bf16.mxu1 %v489_v2 }
   0xc   :  { %439 = vmatpush3.bf16.msra.mxu0 %v438_v19 }
   0xd   :  { %8 = vsyncpa [#allocation3], 0  ;;  %440 = vmatprep.subr.bf16.mxu0 %v489_v2  ;;  %v121_v26 = vld [vmem:[%s655_s2 + $0xb0] sm:$0xff]  ;;  %v122_v27 = vld [vmem:[%s655_s2 + $0xb8] sm:$0xff]  ;;  %418 = vmatpush3.bf16.msra.mxu1 %v417_v22  ;;  %v420_v28 = vpack.c.bf16 %v106_v24, %v105_v23  ;;  %s493_s23 = smov [#allocation2]   ;;  %vm271_vm5 = vcmask 125952  }
   0xe   :  { %419 = vmatprep.subr.bf16.mxu1 %v489_v2  ;;  %v107_v29 = vld [vmem:[%s655_s2 + $0x40] sm:$0xff]  ;;  %v108_v30 = vld [vmem:[%s655_s2 + $0x48] sm:$0xff]  ;;  %v444_v31 = vpack.c.bf16 %v122_v27, %v121_v26  ;;  %v109_v35 = vld [vmem:[%s655_s2 + $0x50] sm:$0xff]  ;;  %s279_s24 = sshll.u32 %s493_s23, 4  ;;  %s280_s24 = int_to_ptr.vmem [resolvable:$true] %s279_s24 }
   0xf   :  { %v123_v32 = vld [vmem:[%s655_s2 + $0xc0] sm:$0xff]  ;;  %v124_v33 = vld [vmem:[%s655_s2 + $0xc8] sm:$0xff]  ;;  %v423_v34 = vpack.c.bf16 %v108_v30, %v107_v29  ;;  %v110_v36 = vld [vmem:[%s655_s2 + $0x58] sm:$0xff]  ;;  %s465_s25 = scalar_lea.vmem %s280_s24, 128  ;;  %p470_p1 = scmp.lt.s32.totalorder %s280_s24, %s280_s24 }
  0x10   :  { %442 = vmatpush3.bf16.msra.mxu0 %v441_v25  ;;  %v447_v37 = vpack.c.bf16 %v124_v33, %v123_v32  ;;  %v125_v38 = vld [vmem:[%s655_s2 + $0xd0] sm:$0xff]  ;;  %v126_v39 = vld [vmem:[%s655_s2 + $0xd8] sm:$0xff]  ;;  %v426_v40 = vpack.c.bf16 %v110_v36, %v109_v35  ;;  %v111_v41 = vld [vmem:[%s655_s2 + $0x60] sm:$0xff]  ;;  %p466_p0 = scmp.ne.s32.totalorder %s280_s24, %s465_s25  ;;  %p471_p2 = scmp.lt.s32.totalorder %s465_s25, %s465_s25 }
  0x11   :  { %443 = vmatprep.subr.bf16.mxu0 %v489_v2  ;;  %421 = vmatpush3.bf16.msra.mxu1 %v420_v28  ;;  %v112_v42 = vld [vmem:[%s655_s2 + $0x68] sm:$0xff]  ;;  %v450_v43 = vpack.c.bf16 %v126_v39, %v125_v38  ;;  %v127_v44 = vld [vmem:[%s655_s2 + $0xe0] sm:$0xff]  ;;  %v113_v47 = vld [vmem:[%s655_s2 + $0x70] sm:$0xff] }
  0x12   :  { %422 = vmatprep.subr.bf16.mxu1 %v489_v2  ;;  %v128_v45 = vld [vmem:[%s655_s2 + $0xe8] sm:$0xff]  ;;  %v429_v46 = vpack.c.bf16 %v112_v42, %v111_v41  ;;  %v114_v48 = vld [vmem:[%s655_s2 + $0x78] sm:$0xff]  ;;  %v129_v51 = vld [vmem:[%s655_s2 + $0xf0] sm:$0xff]  ;;  %p472_p3 = por %p471_p2, %p470_p1 }
  0x13   :  { %v453_v49 = vpack.c.bf16 %v128_v45, %v127_v44  ;;  %v432_v50 = vpack.c.bf16 %v114_v48, %v113_v47  ;;  %v130_v52 = vld [vmem:[%s655_s2 + $0xf8] sm:$0xff] }
  0x14   :  { %445 = vmatpush3.bf16.msra.mxu0 %v444_v31  ;;  %v456_v53 = vpack.c.bf16 %v130_v52, %v129_v51  ;;  %p473_p4 = pnand %p472_p3, %p466_p0 }
  0x15   :  { %446 = vmatprep.subr.bf16.mxu0 %v489_v2  ;;  %424 = vmatpush3.bf16.msra.mxu1 %v423_v34 }
  0x16   :  { %425 = vmatprep.subr.bf16.mxu1 %v489_v2 }
  0x18   :  { %448 = vmatpush3.bf16.msra.mxu0 %v447_v37 }
  0x19   :  { %449 = vmatprep.subr.bf16.mxu0 %v489_v2  ;;  %427 = vmatpush3.bf16.msra.mxu1 %v426_v40 }
  0x1a   :  { %428 = vmatprep.subr.bf16.mxu1 %v489_v2 }
  0x1c   :  { %451 = vmatpush3.bf16.msra.mxu0 %v450_v43 }
  0x1d   :  { %452 = vmatprep.subr.bf16.mxu0 %v489_v2  ;;  %430 = vmatpush3.bf16.msra.mxu1 %v429_v46 }
  0x1e   :  { %431 = vmatprep.subr.bf16.mxu1 %v489_v2 }
  0x20   :  { %454 = vmatpush3.bf16.msra.mxu0 %v453_v49 }
  0x21   :  { %455 = vmatprep.subr.bf16.mxu0 %v489_v2  ;;  %433 = vmatpush3.bf16.msra.mxu1 %v432_v50 }
  0x24   :  { %457 = vmatpush3.bf16.msra.mxu0 %v456_v53 }
  0xda   :  { %v92_v54 = vpop.f32.mrb[0].mxu0 }
  0xdb   :  { %v97_v55 = vcombine.high %v92_v54, %v92_v54  ;;  %v335_v56 = vpop.f32.mrb[1].mxu0  ;;  %369 = vmatmul.mubr.f32.vlgmr.msra.gmra.mrb[0].mxu1 %v92_v54 }
  0xdd   :  { %404 = vmatmul.mubr.f32.vlgmr.msra.gmra.mrb[2].mxu0 %v97_v55 }
 0x1ae   :  { %v197_v57 = vpop.f32.mrb[0].mxu1 }
 0x1af   :  { %272 = vst.msk [vmem:[#allocation2] sm:$0xf] %vm271_vm5, %v197_v57  ;;  %v370_v58 = vpop.f32.mrb[1].mxu1 }
 0x1b0   :  { %v267_v59 = vpop.f32.mrb[2].mxu0 }
 0x1b1   :  { %273 = vst.msk [vmem:[#allocation2 + $0x4] sm:$0xf] %vm271_vm5, %v267_v59  ;;  %v405_v60 = vpop.f32.mrb[3].mxu0 }
 0x1b2   :  { %476 = shalt.err (!%p473_p4)
}
 0x1b3   :  { %s477_s27 = scalar_lea.hbm %s656_s3, 128 }
 0x1b4   :  { %p478_p5 = scmp.ne.s32.totalorder %s656_s3, %s477_s27  ;;  %p481_p6 = scmp.lt.u32.totalorder %s477_s27, %s656_s3 }
 0x1b6   :  { %p483_p7 = pnand %p481_p6, %p478_p5 }
 0x1b8   :  { %486 = shalt.err (!%p483_p7)
}
 0x1b9   :  { %s494_s5 = smov 64   ;;  %s495_s0 = smov 4  }
 0x1ba   :  { %285 = dma.vmem_to_hbm [thread:$0]  %s280_s24, 128, %s656_s3, [#allocation3], %s494_s5, %s494_s5, %s495_s0  }
 0x1bb   :  { %487 = dma.done.wait [#allocation3], 128  }
 0x1bc   :  { %488 = vsyncadd [#allocation3], 4294967168 }
 0x1bd   :  { %289 = vsyncpa [#allocation3], 1 }

</bundles_post_ra>
